<compile_context>
chip_gen: v6e
topology: v6e:2x2x1
jax: 0.10.0
libtpu: 0.0.40
codegen_flags: <defaults>
</compile_context>

<pallas_src>
import jax
import jax.numpy as jnp
import numpy as np
from jax.experimental import pallas as pl
from jax.experimental.pallas import tpu as pltpu


def _round_up(x, m):
    return ((x + m - 1) // m) * m


def _vmem_capacity_bytes():
    try:
        return int(pltpu.get_tpu_info().vmem_capacity_bytes)
    except Exception:
        return 64 * 1024 * 1024  # conservative fallback (v7x per-core VMEM)


def _pick_tile_sublanes(s_sub, num_class, pred_itemsize):
    """Largest spatial tile (in 8-sublane units x 128 lanes) fitting the double-buffered
    VMEM budget for this TPU generation."""
    budget = _vmem_capacity_bytes() // 4  # headroom: pipeline buffers + in-kernel temporaries
    ts = 8
    for cand in (8, 16, 32, 64, 128, 256):
        pred_blk = num_class * cand * 128 * pred_itemsize
        lab_blk = cand * 128 * 4
        work = (num_class + 8) * cand * 128 * 4  # rough f32 working set inside the kernel
        if 2 * (pred_blk + lab_blk) + work <= budget:
            ts = cand
    return ts


def _make_focal_kernel(gamma, smooth):
    gamma = float(gamma)
    eps = 1e-10

    def kernel(x_ref, y_ref, facc_ref):
        # x_ref:    (1, C, TS, 128) logits (native dtype)
        # y_ref:    (1, TS, 128) int32 labels; -1 marks spatial padding
        # facc_ref: (1, 8, 128) f32 accumulator of focal terms (VMEM-resident across k)
        k = pl.program_id(1)

        @pl.when(k == 0)
        def _init():
            facc_ref[...] = jnp.zeros_like(facc_ref)

        num_class = x_ref.shape[1]
        y = y_ref[0]                      # (TS, 128) int32
        valid = y >= 0

        # Channel softmax statistics + gather-at-label as elementwise VPU ops across
        # C per-channel vreg tiles (class axis is a leading dim, not sublane/lane).
        xs = [x_ref[0, c].astype(jnp.float32) for c in range(num_class)]
        m = xs[0]
        for c in range(1, num_class):
            m = jnp.maximum(m, xs[c])
        z = jnp.zeros_like(m)
        x_sel = jnp.zeros_like(m)
        for c in range(num_class):
            z = z + jnp.exp(xs[c] - m)
            x_sel = jnp.where(y == c, xs[c], x_sel)

        # p_true = softmax(x)[label]; divide goes to the EUP via reciprocal.
        p_true = jnp.exp(x_sel - m) * pl.reciprocal(z, approx=False)

        if smooth:  # matches `if self.smooth:` truthiness in the torch module
            pt = smooth + (1.0 - 2.0 * smooth) * p_true + eps
        else:
            pt = p_true + eps

        q = 1.0 - pt
        if gamma == int(gamma) and 0 <= int(gamma) <= 4:
            qg = jnp.ones_like(q)
            for _ in range(int(gamma)):
                qg = qg * q
        else:
            qg = jnp.power(q, jnp.float32(gamma))
        focal = jnp.where(valid, -qg * jnp.log(pt), 0.0)

        # Sublane-grouped partial sum (pure vreg adds) into a lane-dense (8,128) slab.
        ts = focal.shape[0]
        facc_ref[0] = facc_ref[0] + jnp.sum(focal.reshape(ts // 8, 8, 128), axis=0)

    return kernel


def _build_alpha(num_class, alpha, balance_index):
    if alpha is None:
        return jnp.ones((num_class,), jnp.float32)
    if isinstance(alpha, (list, tuple, np.ndarray)):
        a = jnp.asarray(np.asarray(alpha, dtype=np.float32).reshape(num_class))
        return a / jnp.sum(a)
    if isinstance(alpha, float):
        a = np.full((num_class,), 1.0 - alpha, dtype=np.float32)
        a[balance_index] = alpha
        return jnp.asarray(a)
    raise TypeError('Not support alpha type')


def focal_loss(predict, target, num_class, alpha=None, gamma=2.0, smooth=None,
               balance_index=-1, size_average=True):
    """Equivalent of FocalLoss(num_class, alpha, gamma, balance_index, smooth,
    size_average)(predict, target); `predict` is [N, C, ...] logits and `target` is an
    integer class-index map with N * prod(spatial) elements."""
    if smooth is not None and (smooth < 0 or smooth > 1.0):
        raise ValueError('smooth value should be in [0,1]')

    N = predict.shape[0]
    C = predict.shape[1]
    assert C == num_class, "channel dim must equal num_class"
    S = int(np.prod(predict.shape[2:])) if predict.ndim > 2 else 1

    # Native-dtype logits, int32 label map (no f32 up-cast / dense one-hot in HBM).
    pred = predict.reshape(N, C, S)
    labels = target.reshape(N, S).astype(jnp.int32)

    # Generation-aware spatial tiling with dense (sublane, lane) = (S/128, 128) layout.
    s_sub = pl.cdiv(S, 128)
    ts = _pick_tile_sublanes(s_sub, C, pred.dtype.itemsize)
    ts = min(ts, _round_up(s_sub, 8))       # don't over-pad tiny inputs
    s_sub_pad = _round_up(s_sub, ts)
    s_pad = s_sub_pad * 128

    if s_pad != S:
        pred = jnp.pad(pred, ((0, 0), (0, 0), (0, s_pad - S)))
        labels = jnp.pad(labels, ((0, 0), (0, s_pad - S)), constant_values=-1)

    pred4 = pred.reshape(N, C, s_sub_pad, 128)
    lab3 = labels.reshape(N, s_sub_pad, 128)
    num_k = s_sub_pad // ts

    facc = pl.pallas_call(
        _make_focal_kernel(gamma, smooth),
        out_shape=jax.ShapeDtypeStruct((N, 8, 128), jnp.float32),
        grid_spec=pltpu.PrefetchScalarGridSpec(
            num_scalar_prefetch=0,
            grid=(N, num_k),  # batch axis parallel (2 TCs on v7x), spatial reduction last
            in_specs=[
                pl.BlockSpec((1, C, ts, 128), lambda n, k: (n, 0, k, 0)),
                pl.BlockSpec((1, ts, 128), lambda n, k: (n, k, 0)),
            ],
            out_specs=pl.BlockSpec((1, 8, 128), lambda n, k: (n, 0, 0)),
        ),
        compiler_params=pltpu.CompilerParams(
            dimension_semantics=("parallel", "arbitrary"),
            vmem_limit_bytes=int(min(_vmem_capacity_bytes() // 2, 100 * 1024 * 1024)),
        ),
    )(pred4, lab3)

    # Final scalar combine (torch's (M,1,M) alpha broadcast factorizes into a product of sums).
    m_elems = N * S
    sum_focal = jnp.sum(facc)
    if alpha is None:
        sum_alpha = jnp.float32(m_elems)  # alpha == ones(C) -> sum over elements is exactly M
    else:
        # TODO(synk): non-default alpha gather is a tiny plain-XLA op over the label map.
        alpha_vec = _build_alpha(num_class, alpha, balance_index)
        sum_alpha = jnp.sum(alpha_vec[target.reshape(-1).astype(jnp.int32)])

    if size_average:
        return (sum_alpha / m_elems) * (sum_focal / m_elems)
    return sum_alpha * sum_focal


def _focal_loss_ref(predict, target, num_class, alpha=None, gamma=2.0, smooth=None,
                    balance_index=-1, size_average=True):
    """Pure-JAX reference mirroring the PyTorch module exactly (incl. the (M,1,M)
    alpha broadcast, reproduced via its product-of-means factorization)."""
    N, C = predict.shape[0], predict.shape[1]
    logit = jax.nn.softmax(predict.astype(jnp.float32), axis=1)
    logit = logit.reshape(N, C, -1)
    logit = jnp.transpose(logit, (0, 2, 1)).reshape(-1, C)   # (M, C)
    tgt = target.reshape(-1).astype(jnp.int32)               # (M,)
    eps = 1e-10
    if alpha is None:
        alpha_vec = jnp.ones((num_class,), jnp.float32)
    elif isinstance(alpha, (list, tuple, np.ndarray)):
        alpha_vec = jnp.asarray(np.asarray(alpha, np.float32).reshape(num_class))
        alpha_vec = alpha_vec / jnp.sum(alpha_vec)
    else:
        av = np.full((num_class,), 1.0 - alpha, np.float32)
        av[balance_index] = alpha
        alpha_vec = jnp.asarray(av)
    one_hot = jax.nn.one_hot(tgt, num_class, dtype=jnp.float32)
    if smooth:
        one_hot = jnp.clip(one_hot, smooth, 1.0 - smooth)
    pt = jnp.sum(one_hot * logit, axis=1) + eps
    focal = -((1.0 - pt) ** gamma) * jnp.log(pt)             # (M,)
    alpha_i = alpha_vec[tgt]                                 # (M,)
    if size_average:
        return jnp.mean(alpha_i) * jnp.mean(focal)
    return jnp.sum(alpha_i) * jnp.sum(focal)


if __name__ == "__main__":
    key = jax.random.PRNGKey(0)
    k1, k2 = jax.random.split(key)

    N, C, H, W = 2, 4, 16, 16
    predict = jax.random.normal(k1, (N, C, H, W), dtype=jnp.float32)
    target = jax.random.randint(k2, (N, H, W), 0, C)  # class-index labels

    out = focal_loss(predict, target, num_class=C)    # defaults: alpha=None, gamma=2, smooth=None
    out = jax.block_until_ready(out)
    ref = _focal_loss_ref(predict, target, num_class=C)
    assert np.allclose(np.asarray(out), np.asarray(ref), rtol=1e-5, atol=1e-6), (
        f"mismatch: kernel={float(out)} ref={float(ref)}")

    # Extra coverage: spatial size not a multiple of 128 (exercises padding + masking),
    # label smoothing and a list alpha (wrapper-side alpha path).
    k3, k4 = jax.random.split(k1)
    H2, W2 = 10, 13
    predict2 = jax.random.normal(k3, (N, C, H2, W2), dtype=jnp.float32)
    target2 = jax.random.randint(k4, (N, H2, W2), 0, C)
    out2 = jax.block_until_ready(
        focal_loss(predict2, target2, num_class=C, alpha=[1.0, 2.0, 3.0, 4.0],
                   gamma=2.0, smooth=0.1))
    ref2 = _focal_loss_ref(predict2, target2, num_class=C, alpha=[1.0, 2.0, 3.0, 4.0],
                           gamma=2.0, smooth=0.1)
    assert np.allclose(np.asarray(out2), np.asarray(ref2), rtol=1e-5, atol=1e-6), (
        f"mismatch(2): kernel={float(out2)} ref={float(ref2)}")

    print("KERNEL_OK")
</pallas_src>

<mosaic_0001>
module attributes {stable_mosaic.version = 11 : i64} {
  func.func @kernel(%arg0: i32, %arg1: i32, %arg2: memref<1x4x8x128xf32, #tpu.memory_space<vmem>>, %arg3: memref<1x8x128xi32, #tpu.memory_space<vmem>>, %arg4: memref<1x8x128xf32, #tpu.memory_space<vmem>>) attributes {dimension_semantics = [#tpu.dimension_semantics<parallel>, #tpu.dimension_semantics<arbitrary>], iteration_bounds = array<i64: 2, 1>, scalar_prefetch = 0 : i64, scratch_operands = 0 : i64, tpu.core_type = #tpu.core_type<tc>, window_params = [{transform_indices = @transform_0, window_bounds = array<i64: 1, 4, 8, 128>}, {transform_indices = @transform_1, window_bounds = array<i64: 1, 8, 128>}, {transform_indices = @transform_2, window_bounds = array<i64: 1, 8, 128>}]} {
    %c0_i32 = arith.constant 0 : i32
    %0 = arith.cmpi eq, %arg1, %c0_i32 : i32
    %1 = arith.extui %0 : i1 to i32
    %c0_i32_0 = arith.constant 0 : i32
    %2 = arith.cmpi ne, %1, %c0_i32_0 : i32
    scf.if %2 {
      %cst_31 = arith.constant 0.000000e+00 : f32
      %69 = vector.broadcast %cst_31 : f32 to vector<1x8x128xf32>
      %c0_32 = arith.constant 0 : index
      %c0_33 = arith.constant 0 : index
      %c0_34 = arith.constant 0 : index
      %70 = vector.load %arg4[%c0_32, %c0_33, %c0_34] : memref<1x8x128xf32, #tpu.memory_space<vmem>>, vector<1x8x128xf32>
      tpu.vector_store %arg4[%c0_32, %c0_33, %c0_34], %69 {strides = array<i32>} : memref<1x8x128xf32, #tpu.memory_space<vmem>>, vector<1x8x128xf32>,
    } else {
    }
    %c0 = arith.constant 0 : index
    %c0_1 = arith.constant 0 : index
    %c0_2 = arith.constant 0 : index
    %3 = vector.load %arg3[%c0, %c0_1, %c0_2] : memref<1x8x128xi32, #tpu.memory_space<vmem>>, vector<1x8x128xi32>
    %4 = vector.shape_cast %3 : vector<1x8x128xi32> to vector<8x128xi32>
    %c0_i32_3 = arith.constant 0 : i32
    %5 = vector.broadcast %c0_i32_3 : i32 to vector<8x128xi32>
    %6 = arith.cmpi sge, %4, %5 : vector<8x128xi32>
    %c0_4 = arith.constant 0 : index
    %c0_5 = arith.constant 0 : index
    %c0_6 = arith.constant 0 : index
    %c0_7 = arith.constant 0 : index
    %7 = vector.load %arg2[%c0_4, %c0_5, %c0_6, %c0_7] : memref<1x4x8x128xf32, #tpu.memory_space<vmem>>, vector<1x1x8x128xf32>
    %8 = vector.shape_cast %7 : vector<1x1x8x128xf32> to vector<8x128xf32>
    %c0_8 = arith.constant 0 : index
    %c1 = arith.constant 1 : index
    %c0_9 = arith.constant 0 : index
    %c0_10 = arith.constant 0 : index
    %9 = vector.load %arg2[%c0_8, %c1, %c0_9, %c0_10] : memref<1x4x8x128xf32, #tpu.memory_space<vmem>>, vector<1x1x8x128xf32>
    %10 = vector.shape_cast %9 : vector<1x1x8x128xf32> to vector<8x128xf32>
    %c0_11 = arith.constant 0 : index
    %c2 = arith.constant 2 : index
    %c0_12 = arith.constant 0 : index
    %c0_13 = arith.constant 0 : index
    %11 = vector.load %arg2[%c0_11, %c2, %c0_12, %c0_13] : memref<1x4x8x128xf32, #tpu.memory_space<vmem>>, vector<1x1x8x128xf32>
    %12 = vector.shape_cast %11 : vector<1x1x8x128xf32> to vector<8x128xf32>
    %c0_14 = arith.constant 0 : index
    %c3 = arith.constant 3 : index
    %c0_15 = arith.constant 0 : index
    %c0_16 = arith.constant 0 : index
    %13 = vector.load %arg2[%c0_14, %c3, %c0_15, %c0_16] : memref<1x4x8x128xf32, #tpu.memory_space<vmem>>, vector<1x1x8x128xf32>
    %14 = vector.shape_cast %13 : vector<1x1x8x128xf32> to vector<8x128xf32>
    %15 = arith.maximumf %8, %10 : vector<8x128xf32>
    %16 = arith.maximumf %15, %12 : vector<8x128xf32>
    %17 = arith.maximumf %16, %14 : vector<8x128xf32>
    %cst = arith.constant 0.000000e+00 : f32
    %18 = vector.broadcast %cst : f32 to vector<8x128xf32>
    %cst_17 = arith.constant 0.000000e+00 : f32
    %19 = vector.broadcast %cst_17 : f32 to vector<8x128xf32>
    %20 = arith.subf %8, %17 : vector<8x128xf32>
    %21 = math.exp %20 : vector<8x128xf32>
    %22 = arith.addf %18, %21 : vector<8x128xf32>
    %c0_i32_18 = arith.constant 0 : i32
    %23 = vector.broadcast %c0_i32_18 : i32 to vector<8x128xi32>
    %24 = arith.cmpi eq, %4, %23 : vector<8x128xi32>
    %25 = arith.select %24, %8, %19 : vector<8x128xi1>, vector<8x128xf32>
    %26 = arith.subf %10, %17 : vector<8x128xf32>
    %27 = math.exp %26 : vector<8x128xf32>
    %28 = arith.addf %22, %27 : vector<8x128xf32>
    %c1_i32 = arith.constant 1 : i32
    %29 = vector.broadcast %c1_i32 : i32 to vector<8x128xi32>
    %30 = arith.cmpi eq, %4, %29 : vector<8x128xi32>
    %31 = arith.select %30, %10, %25 : vector<8x128xi1>, vector<8x128xf32>
    %32 = arith.subf %12, %17 : vector<8x128xf32>
    %33 = math.exp %32 : vector<8x128xf32>
    %34 = arith.addf %28, %33 : vector<8x128xf32>
    %c2_i32 = arith.constant 2 : i32
    %35 = vector.broadcast %c2_i32 : i32 to vector<8x128xi32>
    %36 = arith.cmpi eq, %4, %35 : vector<8x128xi32>
    %37 = arith.select %36, %12, %31 : vector<8x128xi1>, vector<8x128xf32>
    %38 = arith.subf %14, %17 : vector<8x128xf32>
    %39 = math.exp %38 : vector<8x128xf32>
    %40 = arith.addf %34, %39 : vector<8x128xf32>
    %c3_i32 = arith.constant 3 : i32
    %41 = vector.broadcast %c3_i32 : i32 to vector<8x128xi32>
    %42 = arith.cmpi eq, %4, %41 : vector<8x128xi32>
    %43 = arith.select %42, %14, %37 : vector<8x128xi1>, vector<8x128xf32>
    %44 = arith.subf %43, %17 : vector<8x128xf32>
    %45 = math.exp %44 : vector<8x128xf32>
    %46 = tpu.reciprocal %40 : vector<8x128xf32> -> vector<8x128xf32>
    %47 = arith.mulf %45, %46 : vector<8x128xf32>
    %cst_19 = arith.constant 1.000000e-10 : f32
    %48 = vector.broadcast %cst_19 : f32 to vector<8x128xf32>
    %49 = arith.addf %47, %48 : vector<8x128xf32>
    %cst_20 = arith.constant 1.000000e+00 : f32
    %50 = vector.broadcast %cst_20 : f32 to vector<8x128xf32>
    %51 = arith.subf %50, %49 : vector<8x128xf32>
    %cst_21 = arith.constant 1.000000e+00 : f32
    %52 = vector.broadcast %cst_21 : f32 to vector<8x128xf32>
    %53 = arith.mulf %52, %51 : vector<8x128xf32>
    %54 = arith.mulf %53, %51 : vector<8x128xf32>
    %cst_22 = arith.constant 0.000000e+00 : f32
    %55 = vector.broadcast %cst_22 : f32 to vector<8x128xf32>
    %56 = arith.subf %55, %54 : vector<8x128xf32>
    %57 = math.log %49 : vector<8x128xf32>
    %58 = arith.mulf %56, %57 : vector<8x128xf32>
    %cst_23 = arith.constant 0.000000e+00 : f32
    %59 = vector.broadcast %cst_23 : f32 to vector<8x128xf32>
    %60 = arith.select %6, %58, %59 : vector<8x128xi1>, vector<8x128xf32>
    %c0_24 = arith.constant 0 : index
    %c0_25 = arith.constant 0 : index
    %c0_26 = arith.constant 0 : index
    %61 = vector.load %arg4[%c0_24, %c0_25, %c0_26] : memref<1x8x128xf32, #tpu.memory_space<vmem>>, vector<1x8x128xf32>
    %62 = vector.shape_cast %61 : vector<1x8x128xf32> to vector<8x128xf32>
    %63 = vector.shape_cast %60 : vector<8x128xf32> to vector<1x8x128xf32>
    %cst_27 = arith.constant dense<0.000000e+00> : vector<8x128xf32>
    %64 = vector.multi_reduction <add>, %63, %cst_27 [0] : vector<1x8x128xf32> to vector<8x128xf32>
    %65 = arith.addf %62, %64 : vector<8x128xf32>
    %c0_28 = arith.constant 0 : index
    %c0_29 = arith.constant 0 : index
    %c0_30 = arith.constant 0 : index
    %66 = vector.load %arg4[%c0_28, %c0_29, %c0_30] : memref<1x8x128xf32, #tpu.memory_space<vmem>>, vector<1x8x128xf32>
    %67 = vector.shape_cast %66 : vector<1x8x128xf32> to vector<8x128xf32>
    %68 = vector.shape_cast %65 : vector<8x128xf32> to vector<1x8x128xf32>
    tpu.vector_store %arg4[%c0_28, %c0_29, %c0_30], %68 {strides = array<i32>} : memref<1x8x128xf32, #tpu.memory_space<vmem>>, vector<1x8x128xf32>,
    return
  }
  func.func @transform_0(%arg0: i32, %arg1: i32) -> (i32, i32, i32, i32) {
    %c0_i32 = arith.constant 0 : i32
    %c0_i32_0 = arith.constant 0 : i32
    %c0_i32_1 = arith.constant 0 : i32
    return %arg0, %c0_i32, %arg1, %c0_i32_0 : i32, i32, i32, i32
  }
  func.func @transform_1(%arg0: i32, %arg1: i32) -> (i32, i32, i32) {
    %c0_i32 = arith.constant 0 : i32
    %c0_i32_0 = arith.constant 0 : i32
    return %arg0, %arg1, %c0_i32 : i32, i32, i32
  }
  func.func @transform_2(%arg0: i32, %arg1: i32) -> (i32, i32, i32) {
    %c0_i32 = arith.constant 0 : i32
    %c0_i32_0 = arith.constant 0 : i32
    %c0_i32_1 = arith.constant 0 : i32
    return %arg0, %c0_i32, %c0_i32_0 : i32, i32, i32
  }
}

</mosaic_0001>

<bundles_post_ra>
// kernel: tpu_custom_call.1
= control target key start
LH: loop header
LB: loop body
LE: loop exit
PB: predicated region body
PF: predicated region fallthrough
CT: control target
= control target key end

     0   :  { %7 = vsyncpa [#allocation3], 0  ;;  %s826_s0 = inlined_call_operand.hbm [shape: f32[2,4,8,128], index: 0, kind: input, shape index: {}]   ;;  %s827_s1 = inlined_call_operand.hbm [shape: s32[2,8,128], index: 1, kind: input, shape index: {}]   ;;  %s828_s2 = inlined_call_operand.hbm [shape: f32[2,8,128], index: 2, kind: output, shape index: {}]  }
   0x1   :  { %9 = vsyncpa [#allocation3 + $0x1], 0 }
   0x2   :  { %10 = vsyncpa [#allocation6], 0 }
   0x3   :  { %12 = vsyncpa [#allocation6 + $0x1], 0 }
   0x4   :  { %13 = vsyncpa [#allocation4], 0 }
   0x5   :  { %15 = vsyncpa [#allocation4 + $0x1], 0  ;;  %s660_s9 = smov 0   ;;  %s662_s10 = smov 0  }
   0x6   :  { %s664_s11 = smov 0   ;;  %s666_s12 = smov 0  }
   0x7   :  { %s668_s13 = smov 0   ;;  %s670_s14 = smov 0  }
   0x8 LB: > { %s393_s15 = sadd.s32 4294967295, %s638_s14   ;;  %s394_s16 = sadd.s32 4294967294, %s638_s14   ;;  %s638_s14 = sphi %s670_s14, %s21_s14   ;;  %s634_s13 = sphi %s668_s13, %s840_s13   ;;  %s630_s12 = sphi %s666_s12, %s839_s12   ;;  %s626_s11 = sphi %s664_s11, %s838_s11   ;;  %s622_s10 = sphi %s662_s10, %s837_s10   ;;  %s618_s9 = sphi %s660_s9, %s836_s9  }
   0x9   : > { %s33_s17 = sadd.s32 1, %s634_s13  ;;  %s42_s18 = sadd.s32 1, %s626_s11 }
   0xa   : > { %p35_p0 = scmp.ge.s32.totalorder %s33_s17, 2  ;;  %p49_p1 = scmp.ne.s32.totalorder %s626_s11, %s622_s10 }
   0xb   : > { %p50_p2 = scmp.eq.s32.totalorder %s638_s14, 0  ;;  %p55_p3 = scmp.ne.s32.totalorder %s622_s10, %s618_s9 }
   0xc   : > { %s842_s17 = smov (%p35_p0, %s33_s17), 0  ;;  %p56_p5 = scmp.eq.s32.totalorder %s393_s15, 0 }
   0xd   : > { %p701_p4 = por %p50_p2, %p49_p1  ;;  %s37_s20 = ssub.s32 %s634_s13, %s842_s17 }
   0xe   : > { %p107_p6 = scmp.eq.s32.totalorder %s393_s15, 1  ;;  %p40_p7 = scmp.eq.s32.totalorder %s37_s20, 0 }
   0xf   : > { %p707_p8 = por %p56_p5, %p55_p3  ;;  %p113_p10 = scmp.eq.s32.totalorder %s394_s16, 1 }
  0x10   : > { %p711_p9 = por %p107_p6, %p49_p1  ;;  %p431_p13 = scmp.lt.s32.totalorder %s638_s14, 2 }
  0x11   : > { %s716_s23 = scalar_select %p40_p7, %s626_s11, %s42_s18  }
  0x12   : > { %p718_p11 = por %p113_p10, %p55_p3  ;;  %s725_s25 = sand.u32 1, %s626_s11  }
  0x13   : > { %s397_s26 = sshll.u32 %s725_s25, 5  ;;  %s413_s27 = sshll.u32 %s634_s13, 9 }
  0x14   : > { %s144_s30 = scalar_lea.hbm %s826_s0, %s413_s27  ;;  %s137_s3 = scalar_lea.vmem [#allocation2], %s397_s26 }
  0x15   : > { %s145_s4 = sshll.u32 %s137_s3, 4  ;;  %p734_p0 = pnand %p431_p13, %p701_p4  ;;  %s146_s4 = int_to_ptr.vmem [resolvable:$true] %s145_s4 }
  0x16   : > { %p402_p1 = scmp.ge.s32.totalorder %s638_s14, 1  ;;  %s134_s6 = scalar_lea.sflag [#allocation3], %s725_s25 }
  0x17   : > { %p500_p2 = pneg %p734_p0  ;;  %s511_s7 = scalar_lea.vmem %s146_s4, 512 }
  0x18   : > { %p512_p3 = scmp.ne.s32.totalorder %s146_s4, %s511_s7  ;;  %s640_s8 = smov [#allocation2]  }
  0x19   : > { %s516_s15 = sshll.u32 %s640_s8, 4  ;;  %s517_s15 = int_to_ptr.vmem [resolvable:$false] %s516_s15 }
  0x1a   : > { %p514_p5 = pnand %p512_p3, %p500_p2  ;;  %s518_s16 = scalar_lea.vmem %s517_s15, 1024 }
  0x1b   : > { %p519_p4 = scmp.lt.s32.totalorder %s146_s4, %s517_s15  ;;  %p520_p7 = scmp.lt.s32.totalorder %s518_s16, %s511_s7 }
  0x1c   : > { %p515_p6 = pneg %p514_p5 }
  0x1d   : > { %p521_p10 = por %p520_p7, %p519_p4 }
  0x1f   : > { %p522_p13 = pnand %p521_p10, %p515_p6 }
  0x21   : > { %525 = shalt.err (!%p522_p13)
}
  0x22   : > { %s641_s18 = smov 128   ;;  %s642_s19 = smov 8  }
  0x23   : > { %423 = dma.hbm_to_vmem [thread:$0]  (!%p734_p0), %s144_s30, 512, %s146_s4, %s134_s6, %s641_s18, %s641_s18, %s642_s19  }
  0x24   : > { %p172_p3 = scmp.lt.s32.totalorder %s638_s14, 3  ;;  %s400_s20 = sshll.u32 %s725_s25, 3 }
  0x25   : > { %s401_s26 = sshll.u32 %s634_s13, 7  ;;  %s159_s7 = scalar_lea.vmem [#allocation5], %s400_s20 }
  0x26   : > { %p752_p5 = pnand %p402_p1, %p172_p3  ;;  %s165_s3 = scalar_lea.hbm %s827_s1, %s401_s26 }
  0x27   : > { %s167_s8 = sshll.u32 %s159_s7, 4  ;;  %s156_s15 = scalar_lea.sflag [#allocation6], %s725_s25  ;;  %s168_s8 = int_to_ptr.vmem [resolvable:$true] %s167_s8 }
  0x28   : > { %s539_s16 = scalar_lea.vmem %s168_s8, 128  ;;  %s643_s30 = smov [#allocation5]  }
  0x29   : > { %p540_p6 = scmp.ne.s32.totalorder %s168_s8, %s539_s16  ;;  %s544_s4 = sshll.u32 %s643_s30, 4  ;;  %s545_s4 = int_to_ptr.vmem [resolvable:$false] %s544_s4 }
  0x2a   : > { %s546_s6 = scalar_lea.vmem %s545_s4, 256  ;;  %p547_p1 = scmp.lt.s32.totalorder %s168_s8, %s545_s4 }
  0x2b   : > { %p542_p4 = pnand %p540_p6, %p500_p2  ;;  %p548_p10 = scmp.lt.s32.totalorder %s546_s6, %s539_s16 }
  0x2d   : > { %p543_p7 = pneg %p542_p4  ;;  %p549_p13 = por %p548_p10, %p547_p1 }
  0x2f   : > { %p550_p3 = pnand %p549_p13, %p543_p7 }
  0x31   : > { %553 = shalt.err (!%p550_p3)
}
  0x32   : > { %426 = dma.hbm_to_vmem [thread:$0]  (!%p734_p0), %s165_s3, 128, %s168_s8, %s156_s15  }
  0x33   : > { %176 = sbr.rel (%p752_p5) target bundleno = 142 (0x8e), region = 28  ;;  %s768_s25 = sand.u32 (!%p752_p5), 1, %s622_s10  }
  0x34   : > { %s403_s18 = sshll.u32 (!%p752_p5), %s768_s25, 5  ;;  %s179_s19 = scalar_lea.sflag (!%p752_p5), [#allocation3], %s768_s25 }
  0x35   : > { %s182_s20 = scalar_lea.vmem (!%p752_p5), [#allocation2], %s403_s18 }
  0x38   : > { %605 = dma.done.wait (%p707_p8), %s179_s19, 512  }
  0x39   : > { %607 = vsyncadd (%p707_p8), %s179_s19, 4294966784  ;;  %s404_s5 = sshll.u32 %s768_s25, 3  ;;  %s188_s26 = scalar_lea.sflag [#allocation6], %s768_s25 }
  0x3a   : > { %s191_s27 = scalar_lea.vmem [#allocation5], %s404_s5 }
  0x3b   : > { %609 = dma.done.wait (%p707_p8), %s188_s26, 128  }
  0x3c   : > { %611 = vsyncadd (%p707_p8), %s188_s26, 4294967168  ;;  %v224_v0 = vld [vmem:[%s182_s20] sm:$0xff]  ;;  %v406_v1 = vld [vmem:[%s182_s20 + $0x8] sm:$0xff]  ;;  %s410_s21 = sshll.u32 %s630_s12, 7  ;;  %s216_s28 = scalar_lea.vmem [#allocation7], %s404_s5 }
  0x3d   : > { %v407_v2 = vld [vmem:[%s182_s20 + $0x10] sm:$0xff]  ;;  %v231_v3 = vmax.f32 %v224_v0, %v406_v1  ;;  %v408_v4 = vld [vmem:[%s182_s20 + $0x18] sm:$0xff]  ;;  %v222_v5 = vld [vmem:[%s191_s27] sm:$0xff]  ;;  %s289_s29 = sshll.u32 %s216_s28, 4  ;;  %s287_s8 = scalar_lea.hbm %s828_s2, %s410_s21  ;;  %s290_s29 = int_to_ptr.vmem [resolvable:$true] %s289_s29 }
  0x3e   : > { %vm238_vm0 = vcmp.eq.s32.totalorder %v222_v5, 0  ;;  %vm244_vm1 = vcmp.eq.s32.totalorder %v222_v5, 1  ;;  %vm250_vm2 = vcmp.eq.s32.totalorder %v222_v5, 2  ;;  %vm256_vm3 = vcmp.eq.s32.totalorder %v222_v5, 3  ;;  %s276_s15 = scalar_lea.sflag [#allocation4], %s768_s25  ;;  %s554_s16 = scalar_lea.vmem %s290_s29, 128 }
  0x3f   : > { %v232_v6 = vmax.f32 %v231_v3, %v407_v2  ;;  %v239_v15 = vsel %vm238_vm0, %v224_v0, 0.0  ;;  %vm223_vm4 = vcmp.ge.s32.totalorder %v222_v5, 0  ;;  %p555_p8 = scmp.ne.s32.totalorder %s290_s29, %s554_s16  ;;  %s644_s30 = smov [#allocation7]  }
  0x40   : > { %v245_v17 = vsel %vm244_vm1, %v406_v1, %v239_v15  ;;  %s558_s4 = sshll.u32 %s644_s30, 4  ;;  %s559_s4 = int_to_ptr.vmem [resolvable:$false] %s558_s4 }
  0x41   : > { %v233_v7 = vmax.f32 %v232_v6, %v408_v4  ;;  %v251_v18 = vsel %vm250_vm2, %v407_v2, %v245_v17  ;;  %p556_p0 = pnand %p555_p8, %p711_p9  ;;  %s560_s12 = scalar_lea.vmem %s559_s4, 256 }
  0x42   : > { %v257_v19 = vsel %vm256_vm3, %v408_v4, %v251_v18  ;;  %p561_p5 = scmp.lt.s32.totalorder %s290_s29, %s559_s4  ;;  %p562_p6 = scmp.lt.s32.totalorder %s560_s12, %s554_s16 }
  0x43   : > { %v234_v8 = vsub.f32 %v224_v0, %v233_v7  ;;  %v240_v9 = vsub.f32 %v406_v1, %v233_v7  ;;  %v246_v10 = vsub.f32 %v407_v2, %v233_v7  ;;  %v252_v11 = vsub.f32 %v408_v4, %v233_v7  ;;  %p557_p2 = pneg %p556_p0 }
  0x44   : > { %v258_v20 = vsub.f32 %v257_v19, %v233_v7  ;;  %p563_p4 = por %p562_p6, %p561_p5 }
  0x45   : > { %v235_v12 = vmul.f32 1.442695, %v234_v8  ;;  %v241_v13 = vmul.f32 1.442695, %v240_v9  ;;  %v247_v14 = vmul.f32 1.442695, %v246_v10 }
  0x46   : > { %v253_v16 = vmul.f32 1.442695, %v252_v11  ;;  %v259_v25 = vmul.f32 1.442695, %v258_v20  ;;  %p564_p7 = pnand %p563_p4, %p557_p2 }
  0x47   : > { %484 = vpow2.f32 %v235_v12 }
  0x48   : > { %486 = vpow2.f32 %v241_v13 }
  0x49   : > { %488 = vpow2.f32 %v247_v14 }
  0x4a   : > { %490 = vpow2.f32 %v253_v16 }
  0x4b   : > { %492 = vpow2.f32 %v259_v25 }
  0x54   : > { %v485_v21 = vpop.eup %484 }
  0x55   : > { %v487_v22 = vpop.eup %486 }
  0x56   : > { %v489_v23 = vpop.eup %488  ;;  %v243_v24 = vadd.f32 %v487_v22, %v485_v21 }
  0x57   : > { %v491_v26 = vpop.eup %490 }
  0x58   : > { %v249_v27 = vadd.f32 %v489_v23, %v243_v24  ;;  %v493_v29 = vpop.eup %492 }
  0x5a   : > { %v255_v28 = vadd.f32 %v491_v26, %v249_v27 }
  0x5c   : > { %494 = vrcp.f32 %v255_v28 }
  0x69   : > { %v495_v30 = vpop.eup %494 }
  0x6a   : > { %v262_v31 = vmul.f32 %v495_v30, %v493_v29 }
  0x6c   : > { %v263_v32 = vadd.f32 1e-10, %v262_v31 }
  0x6e   : > { %496 = vlog2.f32 %v263_v32  ;;  %v264_v33 = vsub.f32 1.0, %v263_v32 }
  0x70   : > { %v265_v34 = vmul.f32 %v264_v33, %v264_v33 }
  0x72   : > { %v266_v35 = vsub.f32 0.0, %v265_v34 }
  0x7b   : > { %v497_v36 = vpop.eup %496 }
  0x7c   : > { %v268_v37 = vmul.f32 0.6931472, %v497_v36 }
  0x7e   : > { %v269_v38 = vmul.f32 %v268_v37, %v266_v35 }
  0x80   : > { %v270_v39 = vsel %vm223_vm4, %v269_v38, 0.0 }
  0x81   : > { %274 = vst [vmem:[%s216_s28] sm:$0xff] %v270_v39 }
  0x82   : > { %567 = shalt.err (!%p564_p7)
}
  0x83   : > { %s568_s6 = scalar_lea.hbm %s287_s8, 128  ;;  %s572_s19 = scalar_lea.hbm %s828_s2, 256 }
  0x84   : > { %p569_p1 = scmp.ne.s32.totalorder %s287_s8, %s568_s6  ;;  %p573_p3 = scmp.lt.s32.totalorder %s287_s8, %s828_s2 }
  0x85   : > { %p574_p8 = scmp.lt.s32.totalorder %s572_s19, %s568_s6 }
  0x86   : > { %p570_p10 = pnand %p569_p1, %p711_p9 }
  0x87   : > { %p575_p0 = por %p574_p8, %p573_p3 }
  0x88   : > { %p571_p13 = pneg %p570_p10 }
  0x8a   : > { %p576_p12 = pnand %p575_p0, %p571_p13 }
  0x8c   : > { %579 = shalt.err (!%p576_p12)
}
  0x8d   : > { %418 = dma.vmem_to_hbm [thread:$0]  (%p711_p9), %s290_s29, 128, %s287_s8, %s276_s15  }
  0x8e PF: > { %s301_s26 = sand.u32 1, %s618_s9   ;;  %p835_p2 = scmp.ge.s32.totalorder %s638_s14, 2 }
  0x8f   : > { %s302_s27 = scalar_lea.sflag [#allocation4], %s301_s26 }
  0x90   : > { %p428_p5 = pnand %p835_p2, %p718_p11 }
  0x92   : > { %p429_p6 = pneg %p428_p5 }
  0x94   : > { %613 = dma.done.wait (%p429_p6), %s302_s27, 128  }
  0x95   : > { %615 = vsyncadd (%p429_p6), %s302_s27, 4294967168  ;;  %s21_s14 = sadd.s32 1, %s638_s14   ;;  %s836_s9 = smov %s622_s10 }
  0x96   : > { %p18_p4 = scmp.ge.s32.totalorder %s21_s14, 4   ;;  %s837_s10 = smov %s626_s11 }
  0x97   : > { %s838_s11 = smov %s716_s23  ;;  %s839_s12 = smov %s634_s13 }
  0x98   : > { %s840_s13 = smov %s842_s17  ;;  %20 = sbr.rel (!%p18_p4) target bundleno = 8 (0x8), region = 93 }
  0x9d   :  { %307 = vsyncpa [#allocation3], 1 }
  0x9e   :  { %309 = vsyncpa [#allocation3 + $0x1], 1 }
  0x9f   :  { %310 = vsyncpa [#allocation6], 1 }
  0xa0   :  { %312 = vsyncpa [#allocation6 + $0x1], 1 }
  0xa1   :  { %313 = vsyncpa [#allocation4], 1 }
  0xa2   :  { %315 = vsyncpa [#allocation4 + $0x1], 1 }

</bundles_post_ra>
